<compile_context>
chip_gen: v7x
topology: tpu7x:2x2x1
jax: 0.10.0
libtpu: 0.0.40
codegen_flags: <defaults>
</compile_context>

<pallas_src>
import functools

import jax
import jax.numpy as jnp
from jax import lax
from jax.experimental import pallas as pl
from jax.experimental.pallas import tpu as pltpu

# ----------------------------- model config ---------------------------------
GROWTH = 32
BN_SIZE = 4
BLOCK_CONFIG = (6, 12, 48, 32)      # densenet-201
NUM_INIT_FEATURES = 64
EPS = 1e-5

# ----------------------------- tiling config ---------------------------------
TM_MAX = 256     # M tile (rows of the activation matrix)
TN = 128         # N tile (output channels)
TK = 128         # K tile (contraction / input channels)


def _round_up(v, m):
    return (v + m - 1) // m * m


# ----------------------------- Pallas kernels -------------------------------
def _fused_matmul_kernel(a_ref, b_ref, ps_ref, pb_ref, es_ref, eb_ref,
                         o_ref, acc_ref, *, has_prologue, epi_relu):
    """Tiled matmul with fused BN/ReLU prologue on A and BN(/bias)(+ReLU) epilogue.

    grid = (M tiles, N tiles, K tiles); K is the innermost (reduction) axis.
    """
    k = pl.program_id(2)

    @pl.when(k == 0)
    def _init():
        acc_ref[...] = jnp.zeros_like(acc_ref)

    a = a_ref[...]
    if has_prologue:
        a = jnp.maximum(a.astype(jnp.float32) * ps_ref[...] + pb_ref[...], 0.0)
        a = a.astype(jnp.bfloat16)
    acc_ref[...] += jnp.dot(a, b_ref[...], preferred_element_type=jnp.float32)

    @pl.when(k == pl.num_programs(2) - 1)
    def _store():
        y = acc_ref[...] * es_ref[...] + eb_ref[...]
        if epi_relu:
            y = jnp.maximum(y, 0.0)
        o_ref[...] = y.astype(o_ref.dtype)


def _gap_bn_relu_kernel(x_ref, s_ref, b_ref, o_ref, *, hw):
    """Fused BN + ReLU + global average pool over the (padded) sublane axis."""
    y = jnp.maximum(x_ref[...].astype(jnp.float32) * s_ref[...] + b_ref[...], 0.0)
    rows = lax.broadcasted_iota(jnp.int32, y.shape, 0)
    y = jnp.where(rows < hw, y, 0.0)                      # mask padded rows
    o_ref[...] = jnp.sum(y, axis=0, keepdims=True) * (1.0 / hw)


# ----------------------------- Pallas wrappers -------------------------------
def fused_matmul(a, b_p, n_out, *, prologue=None, epilogue=None,
                 epi_relu=False, out_dtype=jnp.bfloat16):
    """relu?( (relu?(a*ps+pb)) @ b_p * es + eb )[:, :n_out]

    a:    [M, K] activations (any float dtype; cast to bf16, zero-padded).
    b_p:  [Kp, Np] weight, pre-padded to (TK, TN) multiples and pre-cast bf16.
    prologue / epilogue: (scale, shift) f32 vectors pre-padded to Kp / Np.
    """
    M, K = a.shape
    Kp, Np = b_p.shape
    assert Kp % TK == 0 and Np % TN == 0 and Kp >= K

    Mp = _round_up(M, 16)
    TM = Mp if Mp <= TM_MAX else TM_MAX
    Mp = _round_up(Mp, TM)

    a_p = jnp.pad(a.astype(jnp.bfloat16), ((0, Mp - M), (0, Kp - K)))

    if prologue is None:
        ps = jnp.zeros((1, Kp), jnp.float32)
        pb = ps
    else:
        ps = prologue[0].reshape(1, Kp).astype(jnp.float32)
        pb = prologue[1].reshape(1, Kp).astype(jnp.float32)
    if epilogue is None:
        es = jnp.ones((1, Np), jnp.float32)
        eb = jnp.zeros((1, Np), jnp.float32)
    else:
        es = epilogue[0].reshape(1, Np).astype(jnp.float32)
        eb = epilogue[1].reshape(1, Np).astype(jnp.float32)

    kernel = functools.partial(_fused_matmul_kernel,
                               has_prologue=prologue is not None,
                               epi_relu=epi_relu)
    out = pl.pallas_call(
        kernel,
        out_shape=jax.ShapeDtypeStruct((Mp, Np), out_dtype),
        grid_spec=pltpu.PrefetchScalarGridSpec(
            num_scalar_prefetch=0,
            grid=(Mp // TM, Np // TN, Kp // TK),
            in_specs=[
                pl.BlockSpec((TM, TK), lambda i, j, k: (i, k)),
                pl.BlockSpec((TK, TN), lambda i, j, k: (k, j)),
                pl.BlockSpec((1, TK), lambda i, j, k: (0, k)),
                pl.BlockSpec((1, TK), lambda i, j, k: (0, k)),
                pl.BlockSpec((1, TN), lambda i, j, k: (0, j)),
                pl.BlockSpec((1, TN), lambda i, j, k: (0, j)),
            ],
            out_specs=pl.BlockSpec((TM, TN), lambda i, j, k: (i, j)),
            scratch_shapes=[pltpu.VMEM((TM, TN), jnp.float32)],
        ),
        compiler_params=pltpu.CompilerParams(
            dimension_semantics=("parallel", "parallel", "arbitrary")),
    )(a_p, b_p, ps, pb, es, eb)
    return out[:M, :n_out]


def pallas_gap_bn_relu(x4, scale, shift):
    """x4: [N, H, W, C] bf16 -> [N, C] f32 = mean_{H,W} relu(bn(x))."""
    N, H, W, C = x4.shape
    HW = H * W
    xt = jnp.transpose(x4.reshape(N, HW, C), (1, 0, 2)).reshape(HW, N * C)
    HWp = _round_up(HW, 8)
    NC = N * C
    NCp = _round_up(NC, 128)
    xt = jnp.pad(xt, ((0, HWp - HW), (0, NCp - NC)))
    s = jnp.pad(jnp.tile(scale, N), (0, NCp - NC)).reshape(1, NCp)
    b = jnp.pad(jnp.tile(shift, N), (0, NCp - NC)).reshape(1, NCp)
    out = pl.pallas_call(
        functools.partial(_gap_bn_relu_kernel, hw=HW),
        out_shape=jax.ShapeDtypeStruct((1, NCp), jnp.float32),
        grid_spec=pltpu.PrefetchScalarGridSpec(
            num_scalar_prefetch=0,
            grid=(1,),
            in_specs=[
                pl.BlockSpec((HWp, NCp), lambda i: (0, 0)),
                pl.BlockSpec((1, NCp), lambda i: (0, 0)),
                pl.BlockSpec((1, NCp), lambda i: (0, 0)),
            ],
            out_specs=pl.BlockSpec((1, NCp), lambda i: (0, 0)),
        ),
    )(xt, s, b)
    return out[0, :NC].reshape(N, C)


# ----------------------------- plain-JAX glue --------------------------------
def im2col(x, k, stride, pad):
    """x: [N, H, W, C] -> patches [N, Ho, Wo, k*k*C] (row-major over (kh, kw, c))."""
    N, H, W, C = x.shape
    xp = jnp.pad(x, ((0, 0), (pad, pad), (pad, pad), (0, 0)))
    Ho = (H + 2 * pad - k) // stride + 1
    Wo = (W + 2 * pad - k) // stride + 1
    cols = []
    for i in range(k):
        for j in range(k):
            cols.append(xp[:, i:i + stride * Ho:stride, j:j + stride * Wo:stride, :])
    return jnp.concatenate(cols, axis=-1), Ho, Wo


def max_pool_3x3_s2(x):
    # PyTorch MaxPool2d(kernel_size=3, stride=2, padding=1) semantics (NHWC).
    return lax.reduce_window(
        x, jnp.array(-jnp.inf, x.dtype), lax.max,
        window_dimensions=(1, 3, 3, 1),
        window_strides=(1, 2, 2, 1),
        padding=((0, 0), (1, 1), (1, 1), (0, 0)))


def avg_pool_2x2(x):
    # PyTorch AvgPool2d(kernel_size=2, stride=2) with even H, W.
    N, H, W, C = x.shape
    x = x.reshape(N, H // 2, 2, W // 2, 2, C).astype(jnp.float32)
    return x.mean(axis=(2, 4)).astype(jnp.bfloat16)


# ----------------------------- parameter init --------------------------------
class ParamGen:
    def __init__(self, key):
        self.key = key
        self.i = 0

    def normal(self, shape, std):
        self.i += 1
        k = jax.random.fold_in(self.key, self.i)
        return std * jax.random.normal(k, shape, jnp.float32)


def conv_weight_padded(pg, fan_in, fan_out, std=None):
    """Weight in matmul layout [fan_in, fan_out], pre-padded + pre-cast to bf16."""
    kp, npad = _round_up(fan_in, TK), _round_up(fan_out, TN)
    std = (1.0 / fan_in) ** 0.5 if std is None else std
    w = pg.normal((fan_in, fan_out), std)
    return jnp.pad(w, ((0, kp - fan_in), (0, npad - fan_out))).astype(jnp.bfloat16)


def make_bn_padded(pg, c, cp):
    """Folded inference BN (scale, shift), zero-padded to length cp."""
    gamma = 1.0 + pg.normal((c,), 0.05)
    beta = pg.normal((c,), 0.05)
    mean = pg.normal((c,), 0.05)
    var = 1.0 + 0.05 * jnp.abs(pg.normal((c,), 1.0))
    scale = gamma / jnp.sqrt(var + EPS)
    shift = beta - mean * scale
    return jnp.pad(scale, (0, cp - c)), jnp.pad(shift, (0, cp - c))


def init_densenet201_params(key, num_classes):
    pg = ParamGen(key)
    params = {}
    params["conv0_w"] = conv_weight_padded(pg, 7 * 7 * 3, NUM_INIT_FEATURES)
    params["bn0"] = make_bn_padded(pg, NUM_INIT_FEATURES,
                                   _round_up(NUM_INIT_FEATURES, TN))

    ch = NUM_INIT_FEATURES
    blocks = []
    for nb, nlayers in enumerate(BLOCK_CONFIG):
        layers = []
        for _ in range(nlayers):
            layers.append({
                "bn1": make_bn_padded(pg, ch, _round_up(ch, TK)),
                "w1": conv_weight_padded(pg, ch, BN_SIZE * GROWTH),          # 1x1
                "bn2": make_bn_padded(pg, BN_SIZE * GROWTH,
                                      _round_up(BN_SIZE * GROWTH, TN)),
                "w2": conv_weight_padded(pg, 9 * BN_SIZE * GROWTH, GROWTH),  # 3x3
            })
            ch += GROWTH
        block = {"layers": layers}
        if nb < len(BLOCK_CONFIG) - 1:
            block["trans"] = {
                "bn": make_bn_padded(pg, ch, _round_up(ch, TK)),
                "w": conv_weight_padded(pg, ch, ch // 2),                    # 1x1
                "c_out": ch // 2,
            }
            ch = ch // 2
        blocks.append(block)
    params["blocks"] = blocks
    assert ch == 1920
    params["bn5"] = make_bn_padded(pg, ch, ch)          # 1920 is lane-aligned

    # classifier = nn.Linear(1920, num_classes), kaiming_normal_ weight, zero bias
    np_cls = _round_up(num_classes, TN)
    params["cls_w"] = conv_weight_padded(pg, ch, num_classes, std=(2.0 / ch) ** 0.5)
    params["cls_es"] = jnp.pad(jnp.ones((num_classes,), jnp.float32),
                               (0, np_cls - num_classes))
    params["cls_eb"] = jnp.zeros((np_cls,), jnp.float32)   # bias (zeros)
    return params


# ----------------------------- forward pass ----------------------------------
def dense_layer(x, p):
    """torchvision _DenseLayer: BN-ReLU-Conv1x1(128)-BN-ReLU-Conv3x3(32), concat."""
    N, H, W, C = x.shape
    # 1x1 conv with bn1+relu fused as prologue and bn2+relu fused as epilogue.
    h = fused_matmul(x.reshape(-1, C), p["w1"], BN_SIZE * GROWTH,
                     prologue=p["bn1"], epilogue=p["bn2"], epi_relu=True)
    h = h.reshape(N, H, W, BN_SIZE * GROWTH)
    # TODO(synk): fold the 9 shifted taps of the 3x3 conv into the matmul kernel
    # (per-tap accumulation on the NHWC tensor) to avoid the im2col blow-up and
    # the per-layer channel concat.
    cols, _, _ = im2col(h, 3, 1, 1)
    new = fused_matmul(cols.reshape(N * H * W, -1), p["w2"], GROWTH)
    return jnp.concatenate([x, new.reshape(N, H, W, GROWTH)], axis=-1)


def transition(x, p):
    N, H, W, C = x.shape
    h = fused_matmul(x.reshape(-1, C), p["w"], p["c_out"], prologue=p["bn"])
    return avg_pool_2x2(h.reshape(N, H, W, p["c_out"]))


def densenet201_forward(x_nchw, params, num_classes):
    x = jnp.transpose(x_nchw, (0, 2, 3, 1)).astype(jnp.bfloat16)   # NCHW -> NHWC
    N = x.shape[0]

    # stem: conv7x7 s2 p3 -> BN -> ReLU (fused epilogue) -> maxpool3x3 s2 p1
    cols, Ho, Wo = im2col(x, 7, 2, 3)
    h = fused_matmul(cols.reshape(N * Ho * Wo, -1), params["conv0_w"],
                     NUM_INIT_FEATURES, epilogue=params["bn0"], epi_relu=True)
    h = max_pool_3x3_s2(h.reshape(N, Ho, Wo, NUM_INIT_FEATURES))

    for block in params["blocks"]:
        for lp in block["layers"]:
            h = dense_layer(h, lp)
        if "trans" in block:
            h = transition(h, block["trans"])

    # head: BN -> ReLU -> global avg pool (fused) -> linear classifier (fused bias)
    pooled = pallas_gap_bn_relu(h, *params["bn5"])                 # [N, 1920] f32
    logits = fused_matmul(pooled, params["cls_w"], num_classes,
                          epilogue=(params["cls_es"], params["cls_eb"]),
                          out_dtype=jnp.float32)
    return logits


# ----------------------------- main -------------------------------------------
if __name__ == "__main__":
    key = jax.random.PRNGKey(0)
    num_classes = 10
    params = init_densenet201_params(key, num_classes)

    # small but DenseNet-valid input: batch=2, 3 channels, 32x32 spatial
    x = jax.random.normal(jax.random.fold_in(key, 999), (2, 3, 32, 32), jnp.float32)

    logits = densenet201_forward(x, params, num_classes)
    logits = jax.block_until_ready(logits)

    assert logits.shape == (2, num_classes), logits.shape
    assert bool(jnp.all(jnp.isfinite(logits)))
    print("KERNEL_OK")
</pallas_src>

<mosaic_0001>
module attributes {stable_mosaic.version = 11 : i64} {
  func.func @_fused_matmul_kernel(%arg0: i32, %arg1: i32, %arg2: i32, %arg3: memref<256x128xbf16, #tpu.memory_space<vmem>>, %arg4: memref<128x128xbf16, #tpu.memory_space<vmem>>, %arg5: memref<1x128xf32, #tpu.memory_space<vmem>>, %arg6: memref<1x128xf32, #tpu.memory_space<vmem>>, %arg7: memref<1x128xf32, #tpu.memory_space<vmem>>, %arg8: memref<1x128xf32, #tpu.memory_space<vmem>>, %arg9: memref<256x128xbf16, #tpu.memory_space<vmem>>, %arg10: memref<256x128xf32, #tpu.memory_space<vmem>>) attributes {dimension_semantics = [#tpu.dimension_semantics<parallel>, #tpu.dimension_semantics<parallel>, #tpu.dimension_semantics<arbitrary>], iteration_bounds = array<i64: 2, 1, 2>, scalar_prefetch = 0 : i64, scratch_operands = 1 : i64, tpu.core_type = #tpu.core_type<tc>, window_params = [{transform_indices = @transform_0, window_bounds = array<i64: 256, 128>}, {transform_indices = @transform_1, window_bounds = array<i64: 128, 128>}, {transform_indices = @transform_2, window_bounds = array<i64: 1, 128>}, {transform_indices = @transform_3, window_bounds = array<i64: 1, 128>}, {transform_indices = @transform_4, window_bounds = array<i64: 1, 128>}, {transform_indices = @transform_5, window_bounds = array<i64: 1, 128>}, {transform_indices = @transform_6, window_bounds = array<i64: 256, 128>}]} {
    %c0_i32 = arith.constant 0 : i32
    %0 = arith.cmpi eq, %arg2, %c0_i32 : i32
    %1 = arith.extui %0 : i1 to i32
    %c0_i32_0 = arith.constant 0 : i32
    %2 = arith.cmpi ne, %1, %c0_i32_0 : i32
    scf.if %2 {
      %cst_9 = arith.constant 0.000000e+00 : f32
      %12 = vector.broadcast %cst_9 : f32 to vector<256x128xf32>
      %c0_10 = arith.constant 0 : index
      %c0_11 = arith.constant 0 : index
      %13 = vector.load %arg10[%c0_10, %c0_11] : memref<256x128xf32, #tpu.memory_space<vmem>>, vector<256x128xf32>
      tpu.vector_store %arg10[%c0_10, %c0_11], %12 {strides = array<i32>} : memref<256x128xf32, #tpu.memory_space<vmem>>, vector<256x128xf32>,
    } else {
    }
    %c0 = arith.constant 0 : index
    %c0_1 = arith.constant 0 : index
    %3 = vector.load %arg3[%c0, %c0_1] : memref<256x128xbf16, #tpu.memory_space<vmem>>, vector<256x128xbf16>
    %c0_2 = arith.constant 0 : index
    %c0_3 = arith.constant 0 : index
    %4 = vector.load %arg10[%c0_2, %c0_3] : memref<256x128xf32, #tpu.memory_space<vmem>>, vector<256x128xf32>
    %c0_4 = arith.constant 0 : index
    %c0_5 = arith.constant 0 : index
    %5 = vector.load %arg4[%c0_4, %c0_5] : memref<128x128xbf16, #tpu.memory_space<vmem>>, vector<128x128xbf16>
    %cst = arith.constant dense<0.000000e+00> : vector<256x128xf32>
    %6 = tpu.matmul %3, %5, %cst {dimension_numbers = #tpu.dot_dimension_numbers<[1], [0], [0], [1], [0, 0, 1, 1], [], []>} : vector<256x128xbf16>, vector<128x128xbf16>, vector<256x128xf32> -> vector<256x128xf32>
    %7 = arith.addf %4, %6 : vector<256x128xf32>
    %c0_6 = arith.constant 0 : index
    %c0_7 = arith.constant 0 : index
    %8 = vector.load %arg10[%c0_6, %c0_7] : memref<256x128xf32, #tpu.memory_space<vmem>>, vector<256x128xf32>
    tpu.vector_store %arg10[%c0_6, %c0_7], %7 {strides = array<i32>} : memref<256x128xf32, #tpu.memory_space<vmem>>, vector<256x128xf32>,
    %c1_i32 = arith.constant 1 : i32
    %9 = arith.cmpi eq, %arg2, %c1_i32 : i32
    %10 = arith.extui %9 : i1 to i32
    %c0_i32_8 = arith.constant 0 : i32
    %11 = arith.cmpi ne, %10, %c0_i32_8 : i32
    scf.if %11 {
      %c0_9 = arith.constant 0 : index
      %c0_10 = arith.constant 0 : index
      %12 = vector.load %arg10[%c0_9, %c0_10] : memref<256x128xf32, #tpu.memory_space<vmem>>, vector<256x128xf32>
      %c0_11 = arith.constant 0 : index
      %c0_12 = arith.constant 0 : index
      %13 = vector.load %arg7[%c0_11, %c0_12] : memref<1x128xf32, #tpu.memory_space<vmem>>, vector<1x128xf32>
      %14 = vector.broadcast %13 : vector<1x128xf32> to vector<256x128xf32>
      %15 = arith.mulf %12, %14 : vector<256x128xf32>
      %c0_13 = arith.constant 0 : index
      %c0_14 = arith.constant 0 : index
      %16 = vector.load %arg8[%c0_13, %c0_14] : memref<1x128xf32, #tpu.memory_space<vmem>>, vector<1x128xf32>
      %17 = vector.broadcast %16 : vector<1x128xf32> to vector<256x128xf32>
      %18 = arith.addf %15, %17 : vector<256x128xf32>
      %cst_15 = arith.constant 0.000000e+00 : f32
      %19 = vector.broadcast %cst_15 : f32 to vector<256x128xf32>
      %20 = arith.maximumf %18, %19 : vector<256x128xf32>
      %21 = arith.truncf %20 : vector<256x128xf32> to vector<256x128xbf16>
      %c0_16 = arith.constant 0 : index
      %c0_17 = arith.constant 0 : index
      %22 = vector.load %arg9[%c0_16, %c0_17] : memref<256x128xbf16, #tpu.memory_space<vmem>>, vector<256x128xbf16>
      tpu.vector_store %arg9[%c0_16, %c0_17], %21 {strides = array<i32>} : memref<256x128xbf16, #tpu.memory_space<vmem>>, vector<256x128xbf16>,
    } else {
    }
    return
  }
  func.func @transform_0(%arg0: i32, %arg1: i32, %arg2: i32) -> (i32, i32) {
    %c0_i32 = arith.constant 0 : i32
    return %arg0, %arg2 : i32, i32
  }
  func.func @transform_1(%arg0: i32, %arg1: i32, %arg2: i32) -> (i32, i32) {
    %c0_i32 = arith.constant 0 : i32
    return %arg2, %arg1 : i32, i32
  }
  func.func @transform_2(%arg0: i32, %arg1: i32, %arg2: i32) -> (i32, i32) {
    %c0_i32 = arith.constant 0 : i32
    %c0_i32_0 = arith.constant 0 : i32
    return %c0_i32, %arg2 : i32, i32
  }
  func.func @transform_3(%arg0: i32, %arg1: i32, %arg2: i32) -> (i32, i32) {
    %c0_i32 = arith.constant 0 : i32
    %c0_i32_0 = arith.constant 0 : i32
    return %c0_i32, %arg2 : i32, i32
  }
  func.func @transform_4(%arg0: i32, %arg1: i32, %arg2: i32) -> (i32, i32) {
    %c0_i32 = arith.constant 0 : i32
    %c0_i32_0 = arith.constant 0 : i32
    return %c0_i32, %arg1 : i32, i32
  }
  func.func @transform_5(%arg0: i32, %arg1: i32, %arg2: i32) -> (i32, i32) {
    %c0_i32 = arith.constant 0 : i32
    %c0_i32_0 = arith.constant 0 : i32
    return %c0_i32, %arg1 : i32, i32
  }
  func.func @transform_6(%arg0: i32, %arg1: i32, %arg2: i32) -> (i32, i32) {
    %c0_i32 = arith.constant 0 : i32
    return %arg0, %arg1 : i32, i32
  }
}

</mosaic_0001>

<bundles_post_ra>
// kernel: tpu_custom_call.1
= control target key start
LH: loop header
LB: loop body
LE: loop exit
PB: predicated region body
PF: predicated region fallthrough
CT: control target
= control target key end

     0   :  { %s2547_s0 = inlined_call_operand.hbm [shape: bf16[512,256], index: 0, kind: input, shape index: {}]   ;;  %s2548_s1 = inlined_call_operand.hbm [shape: bf16[256,128], index: 1, kind: input, shape index: {}]   ;;  %s2549_s2 = inlined_call_operand.vmem [shape: f32[1,256], index: 2, kind: input, shape index: {}]   ;;  %s2550_s3 = inlined_call_operand.vmem [shape: f32[1,256], index: 3, kind: input, shape index: {}]   ;;  %s2551_s4 = inlined_call_operand.vmem [shape: f32[1,128], index: 4, kind: input, shape index: {}]   ;;  %s2552_s5 = inlined_call_operand.vmem [shape: f32[1,128], index: 5, kind: input, shape index: {}]   ;;  %s2553_s6 = inlined_call_operand.hbm [shape: bf16[512,128], index: 6, kind: output, shape index: {}]  }
   0x1   :  { %2565 = sst [smem:[#allocation17_spill]] %s2547_s0 }
   0x2   :  { %2566 = sst [smem:[#allocation18_spill]] %s2548_s1 }
   0x3   :  { %2567 = sst [smem:[#allocation19_spill]] %s2551_s4 }
   0x4   :  { %2568 = sst [smem:[#allocation20_spill]] %s2552_s5 }
   0x5   :  { %2569 = sst [smem:[#allocation21_spill]] %s2553_s6 }
   0x6   :  { %11 = vsyncpa [#allocation4], 0 }
   0x7   :  { %13 = vsyncpa [#allocation4 + $0x1], 0 }
   0x8   :  { %14 = vsyncpa [#allocation7], 0 }
   0x9   :  { %16 = vsyncpa [#allocation7 + $0x1], 0 }
   0xa   :  { %17 = vsyncpa [#allocation5], 0 }
   0xb   :  { %19 = vsyncpa [#allocation5 + $0x1], 0  ;;  %s2079_s21 = smov 0   ;;  %s2081_s2 = smov 0  }
   0xc   :  { %s2083_s3 = smov 0   ;;  %s2085_s22 = smov 0  }
   0xd   :  { %s2087_s23 = smov 0   ;;  %s2089_s24 = smov 0  }
   0xe   :  { %s2091_s25 = smov 0   ;;  %s2093_s26 = smov 0  }
   0xf   :  { %s2095_s27 = smov 0   ;;  %s2097_s28 = smov 0  }
  0x10   :  { %s2099_s29 = smov 0   ;;  %s2101_s30 = smov 0  }
  0x11   :  { %s2103_s7 = smov 0   ;;  %s2105_s8 = smov 0  }
  0x12 LB: > { %2570 = sst [smem:[#allocation12_spill]] %s1981_s21  ;;  %s37_s9 = sadd.s32 1, %s2025_s30  ;;  %s2033_s8 = sphi %s2105_s8, %s25_s8   ;;  %s2029_s7 = sphi %s2103_s7, %s2618_s7   ;;  %s2025_s30 = sphi %s2101_s30, %s2617_s30   ;;  %s2021_s29 = sphi %s2099_s29, %s2616_s29   ;;  %s2017_s28 = sphi %s2097_s28, %s2615_s28   ;;  %s2013_s27 = sphi %s2095_s27, %s2614_s27   ;;  %s2009_s26 = sphi %s2093_s26, %s2613_s26   ;;  %s2005_s25 = sphi %s2091_s25, %s2612_s25   ;;  %s2001_s24 = sphi %s2089_s24, %s2611_s24   ;;  %s1997_s23 = sphi %s2087_s23, %s2610_s23   ;;  %s1993_s22 = sphi %s2085_s22, %s2609_s22   ;;  %s1989_s3 = sphi %s2083_s3, %s2608_s3   ;;  %s1985_s2 = sphi %s2081_s2, %s2607_s2   ;;  %s1981_s21 = sphi %s2079_s21, %s2606_s21  }
  0x13   : > { %2571 = sst [smem:[#allocation13_spill]] %s2017_s28  ;;  %s44_s10 = sadd.s32 1, %s2029_s7 }
  0x14   : > { %2572 = sst [smem:[#allocation14_spill]] %s2021_s29  ;;  %p38_p0 = scmp.ge.s32.totalorder %s37_s9, 2 }
  0x15   : > { %s53_s11 = sadd.s32 1, %s2013_s27  ;;  %p60_p1 = scmp.ne.s32.totalorder %s2013_s27, %s2009_s26 }
  0x16   : > { %p2558_p2 = scmp.eq.s32.totalorder %s2033_s8, 0  ;;  %s2620_s9 = smov (%p38_p0, %s37_s9), 0 }
  0x17   : > { %2573 = sst [smem:[#allocation15_spill]] %s2620_s9  ;;  %s2622_s10 = smov (!%p38_p0, %s44_s10), %s2029_s7 }
  0x18   : > { %s2160_s12 = ssub.s32 %s2025_s30, %s2620_s9  ;;  %p2164_p3 = por %p2558_p2, %p60_p1 }
  0x19   : > { %p46_p4 = scmp.ge.s32.totalorder %s2622_s10, 2  ;;  %s213_s14 = sadd.s32 1, %s1989_s3 }
  0x1a   : > { %p2557_p7 = scmp.lt.s32.totalorder %s2033_s8, 4  ;;  %s262_s16 = sand.u32 1, %s2013_s27  }
  0x1b   : > { %s2624_s10 = smov (%p46_p4, %s2622_s10), 0  ;;  %s1368_s20 = sshll.u32 %s262_s16, 7 }
  0x1c   : > { %2575 = sst [smem:[#allocation16_spill]] %s2624_s10  ;;  %s48_s15 = ssub.s32 %s2029_s7, %s2624_s10 }
  0x1d   : > { %s50_s17 = sor.u32 %s2160_s12, %s48_s15  ;;  %p211_p8 = scmp.eq.s32.totalorder %s48_s15, 0 }
  0x1e   : > { %p51_p9 = scmp.eq.s32.totalorder %s50_s17, 0  ;;  %s1444_s9 = sshll.u32 %s2029_s7, 6 }
  0x1f   : > { %s2180_s18 = scalar_select %p211_p8, %s1989_s3, %s213_s14  }
  0x20   : > { %s2183_s19 = scalar_select %p51_p9, %s2013_s27, %s53_s11  }
  0x21   : > { %s272_s6 = sadd.s32 %s2025_s30, %s1444_s9  ;;  %s266_s5 = scalar_lea.vmem [#allocation3], %s1368_s20 }
  0x22   : > { %s1371_s29 = sshll.u32 %s272_s6, 6  ;;  %s275_s4 = sshll.u32 %s266_s5, 4  ;;  %s2192_s4 = int_to_ptr.vmem [resolvable:$true] %s275_s4 }
  0x23   : > { %s2576_s0 = sld [smem:[#allocation17_spill]]  ;;  %p2198_p10 = pnand %p2557_p7, %p2164_p3 }
  0x24   : > { %p1375_p11 = scmp.ge.s32.totalorder %s2033_s8, 1  ;;  %s2203_s5 = scalar_lea.sflag [#allocation4], %s262_s16 }
  0x25   : > { %p1825_p13 = pneg %p2198_p10 }
  0x29   : > { %s2190_s21 = scalar_lea.hbm %s2576_s0, %s1371_s29  ;;  %s1828_s29 = scalar_lea.hbm %s2576_s0, 8192 }
  0x2a   : > { %s1823_s1 = scalar_lea.hbm %s2190_s21, 2048  ;;  %p1829_p3 = scmp.lt.u32.totalorder %s2190_s21, %s2576_s0 }
  0x2b   : > { %p1824_p12 = scmp.ne.s32.totalorder %s2190_s21, %s1823_s1  ;;  %p1830_p4 = scmp.lt.u32.totalorder %s1828_s29, %s1823_s1 }
  0x2c   : > { %p1832_p9 = scmp.lt.u32.totalorder %s1823_s1, %s2190_s21 }
  0x2d   : > { %p1826_p0 = pnand %p1825_p13, %p1824_p12  ;;  %p1831_p8 = por %p1830_p4, %p1829_p3 }
  0x2f   : > { %p1827_p1 = pneg %p1826_p0  ;;  %p1833_p7 = por %p1832_p9, %p1831_p8 }
  0x31   : > { %p1834_p2 = pnand %p1833_p7, %p1827_p1 }
  0x33   : > { %1837 = shalt.err (!%p1834_p2)
}
  0x34   : > { %s1838_s14 = scalar_lea.vmem %s2192_s4, 2048  ;;  %s2035_s15 = smov [#allocation3]  }
  0x35   : > { %p1839_p12 = scmp.ne.s32.totalorder %s2192_s4, %s1838_s14  ;;  %s1843_s16 = sshll.u32 %s2035_s15, 4  ;;  %s1844_s16 = int_to_ptr.vmem [resolvable:$false] %s1843_s16 }
  0x36   : > { %s1845_s17 = scalar_lea.vmem %s1844_s16, 4096  ;;  %p1846_p6 = scmp.lt.s32.totalorder %s2192_s4, %s1844_s16 }
  0x37   : > { %p1841_p0 = pnand %p1839_p12, %p1825_p13  ;;  %p1847_p3 = scmp.lt.s32.totalorder %s1845_s17, %s1838_s14 }
  0x39   : > { %p1842_p5 = pneg %p1841_p0  ;;  %p1848_p4 = por %p1847_p3, %p1846_p6 }
  0x3b   : > { %p1849_p8 = pnand %p1848_p4, %p1842_p5 }
  0x3d   : > { %1852 = shalt.err (!%p1849_p8)
}
  0x3e   : > { %s2036_s20 = smov 128   ;;  %s2559_s1 = smov 64  }
  0x3f   : > { %s2560_s6 = smov 4   ;;  %s2578_s28 = sld [smem:[#allocation12_spill]] }
  0x40   : > { %1671 = dma.hbm_to_vmem [thread:$0]  (!%p2198_p10), %s2190_s21, 2048, %s2192_s4, %s2203_s5, %s2036_s20, %s2559_s1, %s2560_s6  }
  0x41   : > { %p317_p2 = scmp.lt.s32.totalorder %s2033_s8, 5  ;;  %s1362_s9 = sadd.s32 4294967295, %s2033_s8  }
  0x42   : > { %s1363_s13 = sadd.s32 4294967294, %s2033_s8   ;;  %p67_p6 = scmp.eq.s32.totalorder %s1362_s9, 0 }
  0x43   : > { %p2236_p5 = pnand %p1375_p11, %p317_p2  ;;  %s81_s14 = sadd.s32 1, %s2001_s24 }
  0x44   : > { %p2580_p7 = scmp.eq.s32.totalorder %s2160_s12, 0  ;;  %p2581_p13 = scmp.ne.s32.totalorder %s2009_s26, %s2005_s25 }
  0x45   : > { %p88_p10 = scmp.ne.s32.totalorder %s2001_s24, %s1997_s23  ;;  %p94_p11 = scmp.ne.s32.totalorder %s1997_s23, %s1993_s22 }
  0x46   : > { %s2246_s15 = scalar_select %p2580_p7, %s2001_s24, %s81_s14  }
  0x47   : > { %p2251_p1 = por %p67_p6, %p2581_p13  ;;  %p223_p9 = scmp.ne.s32.totalorder %s1989_s3, %s1985_s2 }
  0x48   : > { %p2583_p12 = scmp.eq.s32.totalorder %s2033_s8, 0  ;;  %p224_p3 = scmp.eq.s32.totalorder %s1362_s9, 3 }
  0x49   : > { %s2582_s11 = scalar_select %p2251_p1, 1, 0 }
  0x4a   : > { %p90_p0 = por %p88_p10, %p2583_p12  ;;  %p2263_p4 = por %p94_p11, %p67_p6 }
  0x4b   : > { %p229_p8 = scmp.ne.s32.totalorder %s1985_s2, %s2578_s28  ;;  %p2269_p2 = por %p224_p3, %p223_p9 }
  0x4c   : > { %s2584_s4 = scalar_select %p2263_p4, 1, 0 }
  0x4d   : > { %s2585_s21 = scalar_select %p2269_p2, 1, 0 }
  0x4e   : > { %p230_p7 = scmp.eq.s32.totalorder %s1363_s13, 3  ;;  %s285_s25 = sand.u32 1, %s2001_s24  }
  0x4f   : > { %s1445_s12 = sshll.u32 %s2025_s30, 10  ;;  %s1372_s22 = sshll.u32 %s285_s25, 6 }
  0x50   : > { %p2275_p13 = por %p230_p7, %p229_p8  ;;  %s2587_s20 = sld [smem:[#allocation18_spill]] }
  0x51   : > { %p2588_p6 = scmp.lt.s32.totalorder %s2033_s8, 4  ;;  %s289_s13 = scalar_lea.vmem [#allocation6], %s1372_s22 }
  0x52   : > { %s2586_s5 = scalar_select %p2275_p13, 1, 0 }
  0x53   : > { %p2286_p10 = pnand %p2588_p6, %p90_p0  ;;  %s297_s14 = sshll.u32 %s289_s13, 4  ;;  %s2290_s14 = int_to_ptr.vmem [resolvable:$true] %s297_s14 }
  0x54   : > { %s2292_s1 = scalar_lea.sflag [#allocation7], %s285_s25 }
  0x55   : > { %p1855_p9 = pneg %p2286_p10 }
  0x56   : > { %s2282_s9 = scalar_lea.hbm %s2587_s20, %s1445_s12  ;;  %s1858_s6 = scalar_lea.hbm %s2587_s20, 2048 }
  0x57   : > { %s1853_s16 = scalar_lea.hbm %s2282_s9, 1024  ;;  %p1859_p0 = scmp.lt.u32.totalorder %s2282_s9, %s2587_s20 }
  0x58   : > { %p1854_p11 = scmp.ne.s32.totalorder %s2282_s9, %s1853_s16  ;;  %p1860_p8 = scmp.lt.u32.totalorder %s1858_s6, %s1853_s16 }
  0x59   : > { %p1862_p6 = scmp.lt.u32.totalorder %s1853_s16, %s2282_s9 }
  0x5a   : > { %p1856_p12 = pnand %p1855_p9, %p1854_p11  ;;  %p1861_p7 = por %p1860_p8, %p1859_p0 }
  0x5c   : > { %p1857_p3 = pneg %p1856_p12  ;;  %p1863_p13 = por %p1862_p6, %p1861_p7 }
  0x5e   : > { %p1864_p2 = pnand %p1863_p13, %p1857_p3 }
  0x60   : > { %1867 = shalt.err (!%p1864_p2)
}
  0x61   : > { %s1868_s25 = scalar_lea.vmem %s2290_s14, 1024  ;;  %s2039_s22 = smov [#allocation6]  }
  0x62   : > { %p1869_p11 = scmp.ne.s32.totalorder %s2290_s14, %s1868_s25  ;;  %s1873_s13 = sshll.u32 %s2039_s22, 4  ;;  %s1874_s13 = int_to_ptr.vmem [resolvable:$false] %s1873_s13 }
  0x63   : > { %s1875_s0 = scalar_lea.vmem %s1874_s13, 2048  ;;  %p1876_p1 = scmp.lt.s32.totalorder %s2290_s14, %s1874_s13 }
  0x64   : > { %p1871_p12 = pnand %p1869_p11, %p1855_p9  ;;  %p1877_p0 = scmp.lt.s32.totalorder %s1875_s0, %s1868_s25 }
  0x66   : > { %p1872_p4 = pneg %p1871_p12  ;;  %p1878_p8 = por %p1877_p0, %p1876_p1 }
  0x68   : > { %p1879_p7 = pnand %p1878_p8, %p1872_p4 }
  0x6a   : > { %1882 = shalt.err (!%p1879_p7)
}
  0x6b   : > { %s2590_s10 = smov 4   ;;  %s2591_s6 = smov 64  }
  0x6c   : > { %1674 = dma.hbm_to_vmem [thread:$0]  (!%p2286_p10), %s2282_s9, 1024, %s2290_s14, %s2292_s1, %s2591_s6, %s2591_s6, %s2590_s10  }
  0x6d   : > { %321 = sbr.rel (%p2236_p5) target bundleno = 473 (0x1d9), region = 44  ;;  %s323_s16 = sand.u32 (!%p2236_p5), 1, %s2009_s26  }
  0x6e   : > { %s1376_s12 = sshll.u32 (!%p2236_p5), %s323_s16, 7  ;;  %s324_s17 = scalar_lea.sflag (!%p2236_p5), [#allocation4], %s323_s16 }
  0x6f   : > { %s2326_s25 = scalar_lea.vmem (!%p2236_p5), [#allocation3], %s1376_s12  ;;  %p2592_p1 = scmp.ne.s32.totalorder (!%p2236_p5), %s2582_s11, 0 }
  0x74   : > { %1968 = dma.done.wait (%p2592_p1), %s324_s17, 2048  }
  0x75   : > { %1970 = vsyncadd (%p2592_p1), %s324_s17, 4294965248  ;;  %s332_s28 = sand.u32 1, %s1997_s23   ;;  %p2593_p5 = scmp.ne.s32.totalorder %s2584_s4, 0 }
  0x76   : > { %s1377_s22 = sshll.u32 %s332_s28, 6  ;;  %s333_s1 = scalar_lea.sflag [#allocation7], %s332_s28 }
  0x77   : > { %s2333_s9 = scalar_lea.vmem [#allocation6], %s1377_s22 }
  0x78   : > { %1972 = dma.done.wait (%p2593_p5), %s333_s1, 1024  }
  0x79   : > { %1974 = vsyncadd (%p2593_p5), %s333_s1, 4294966272  ;;  %s379_s29 = sand.u32 1, %s1985_s2   ;;  %s2594_s11 = sld [smem:[#allocation13_spill]] }
  0x7a   : > { %s1378_s14 = sshll.u32 %s379_s29, 7 }
  0x7b   : > { %s2342_s13 = scalar_lea.vmem [#allocation8], %s1378_s14 }
  0x7f   : > { %p1379_p4 = scmp.ne.s32.totalorder %s2594_s11, 0 }
  0x80   : > { %v2040_v0 = vmov (!%p1379_p4), 0.0  }
  0x81   : > { %401 = sbr.rel (%p1379_p4) target bundleno = 145 (0x91), region = 56  ;;  %402 = vst [vmem:[#allocation2] sm:$0xff] (!%p1379_p4), %v2040_v0  ;;  %403 = vst [vmem:[#allocation2 + $0x8] sm:$0xff] (!%p1379_p4), %v2040_v0 }
  0x82   : > { %404 = vst [vmem:[#allocation2 + $0x10] sm:$0xff] (!%p1379_p4), %v2040_v0  ;;  %405 = vst [vmem:[#allocation2 + $0x18] sm:$0xff] (!%p1379_p4), %v2040_v0 }
  0x83   : > { %406 = vst [vmem:[#allocation2 + $0x20] sm:$0xff] (!%p1379_p4), %v2040_v0  ;;  %407 = vst [vmem:[#allocation2 + $0x28] sm:$0xff] (!%p1379_p4), %v2040_v0 }
  0x84   : > { %408 = vst [vmem:[#allocation2 + $0x30] sm:$0xff] (!%p1379_p4), %v2040_v0  ;;  %409 = vst [vmem:[#allocation2 + $0x38] sm:$0xff] (!%p1379_p4), %v2040_v0 }
  0x85   : > { %410 = vst [vmem:[#allocation2 + $0x40] sm:$0xff] (!%p1379_p4), %v2040_v0  ;;  %411 = vst [vmem:[#allocation2 + $0x48] sm:$0xff] (!%p1379_p4), %v2040_v0 }
  0x86   : > { %412 = vst [vmem:[#allocation2 + $0x50] sm:$0xff] (!%p1379_p4), %v2040_v0  ;;  %413 = vst [vmem:[#allocation2 + $0x58] sm:$0xff] (!%p1379_p4), %v2040_v0 }
  0x87   : > { %414 = vst [vmem:[#allocation2 + $0x60] sm:$0xff] (!%p1379_p4), %v2040_v0  ;;  %415 = vst [vmem:[#allocation2 + $0x68] sm:$0xff] (!%p1379_p4), %v2040_v0 }
  0x88   : > { %416 = vst [vmem:[#allocation2 + $0x70] sm:$0xff] %v2040_v0  ;;  %417 = vst [vmem:[#allocation2 + $0x78] sm:$0xff] %v2040_v0 }
  0x89   : > { %418 = vst [vmem:[#allocation2 + $0x80] sm:$0xff] %v2040_v0  ;;  %419 = vst [vmem:[#allocation2 + $0x88] sm:$0xff] %v2040_v0 }
  0x8a   : > { %420 = vst [vmem:[#allocation2 + $0x90] sm:$0xff] %v2040_v0  ;;  %421 = vst [vmem:[#allocation2 + $0x98] sm:$0xff] %v2040_v0 }
  0x8b   : > { %422 = vst [vmem:[#allocation2 + $0xa0] sm:$0xff] %v2040_v0  ;;  %423 = vst [vmem:[#allocation2 + $0xa8] sm:$0xff] %v2040_v0 }
  0x8c   : > { %424 = vst [vmem:[#allocation2 + $0xb0] sm:$0xff] %v2040_v0  ;;  %425 = vst [vmem:[#allocation2 + $0xb8] sm:$0xff] %v2040_v0 }
  0x8d   : > { %426 = vst [vmem:[#allocation2 + $0xc0] sm:$0xff] %v2040_v0  ;;  %427 = vst [vmem:[#allocation2 + $0xc8] sm:$0xff] %v2040_v0 }
  0x8e   : > { %428 = vst [vmem:[#allocation2 + $0xd0] sm:$0xff] %v2040_v0  ;;  %429 = vst [vmem:[#allocation2 + $0xd8] sm:$0xff] %v2040_v0 }
  0x8f   : > { %430 = vst [vmem:[#allocation2 + $0xe0] sm:$0xff] %v2040_v0  ;;  %431 = vst [vmem:[#allocation2 + $0xe8] sm:$0xff] %v2040_v0 }
  0x90   : > { %432 = vst [vmem:[#allocation2 + $0xf0] sm:$0xff] %v2040_v0  ;;  %433 = vst [vmem:[#allocation2 + $0xf8] sm:$0xff] %v2040_v0 }
  0x91 PF: > { %v1799_v1 = vld [vmem:[%s2333_s9] sm:$0xff]   ;;  %v1800_v2 = vld [vmem:[%s2333_s9 + $0x8] sm:$0xff]   ;;  %v1801_v3 = vld [vmem:[%s2333_s9 + $0x10] sm:$0xff]   ;;  %s2595_s4 = sld [smem:[#allocation13_spill]] }
  0x92   : > { %1598 = vmatprep.subr.bf16.mxu0 %v1799_v1  ;;  %1646 = vmatprep.subr.bf16.mxu1 %v1799_v1  ;;  %v1802_v4 = vld [vmem:[%s2333_s9 + $0x18] sm:$0xff]   ;;  %v1807_v5 = vld [vmem:[%s2326_s25] sm:$0xff]   ;;  %v1804_v8 = vld [vmem:[%s2333_s9 + $0x28] sm:$0xff]  }
  0x93   : > { %1599 = vmatpush3.bf16.msra.mxu0 %v1799_v1  ;;  %1654 = vmatpush3.bf16.msra.mxu1 %v1799_v1  ;;  %v1808_v6 = vld [vmem:[%s2326_s25 + $0x40] sm:$0xff]   ;;  %v1805_v9 = vld [vmem:[%s2333_s9 + $0x30] sm:$0xff]   ;;  %v1806_v10 = vld [vmem:[%s2333_s9 + $0x38] sm:$0xff]  }
  0x94   : > { %1600 = vmatprep.subr.bf16.mxu0 %v1800_v2  ;;  %1647 = vmatprep.subr.bf16.mxu1 %v1800_v2  ;;  %v1803_v7 = vld [vmem:[%s2333_s9 + $0x20] sm:$0xff]   ;;  %v1809_v11 = vld [vmem:[%s2326_s25 + $0x8] sm:$0xff]   ;;  %v1811_v13 = vld [vmem:[%s2326_s25 + $0x10] sm:$0xff]  }
  0x95   : > { %1614 = vmatprep.mubr.bf16.mxu0 %v1807_v5  ;;  %1630 = vmatprep.mubr.bf16.mxu1 %v1808_v6  ;;  %v1810_v12 = vld [vmem:[%s2326_s25 + $0x48] sm:$0xff]   ;;  %v1812_v14 = vld [vmem:[%s2326_s25 + $0x50] sm:$0xff]   ;;  %v1813_v15 = vld [vmem:[%s2326_s25 + $0x18] sm:$0xff]  }
  0x96   : > { %v1814_v16 = vld [vmem:[%s2326_s25 + $0x58] sm:$0xff]   ;;  %v1815_v17 = vld [vmem:[%s2326_s25 + $0x20] sm:$0xff]   ;;  %v1817_v19 = vld [vmem:[%s2326_s25 + $0x28] sm:$0xff]  }
  0x97   : > { %1601 = vmatpush3.bf16.msra.mxu0 %v1800_v2  ;;  %1655 = vmatpush3.bf16.msra.mxu1 %v1800_v2  ;;  %v1816_v18 = vld [vmem:[%s2326_s25 + $0x60] sm:$0xff]   ;;  %v1818_v20 = vld [vmem:[%s2326_s25 + $0x68] sm:$0xff]   ;;  %v1819_v21 = vld [vmem:[%s2326_s25 + $0x30] sm:$0xff]   ;;  %p1404_p2 = scmp.ne.s32.totalorder %s2595_s4, 1 }
  0x98   : > { %1602 = vmatprep.subr.bf16.mxu0 %v1801_v3  ;;  %1648 = vmatprep.subr.bf16.mxu1 %v1801_v3  ;;  %v1820_v22 = vld [vmem:[%s2326_s25 + $0x70] sm:$0xff]   ;;  %v1821_v23 = vld [vmem:[%s2326_s25 + $0x38] sm:$0xff]   ;;  %v466_v27 = vld [vmem:[#allocation2] sm:$0xff]  ;;  %s2596_s6 = sld [smem:[#allocation19_spill]] (!%p1404_p2)  ;;  %s2597_s17 = sld [smem:[#allocation20_spill]] (!%p1404_p2) }
  0x99   : > { %v1822_v24 = vld [vmem:[%s2326_s25 + $0x78] sm:$0xff]   ;;  %v468_v25 = vld [vmem:[#allocation2 + $0x10] sm:$0xff]  ;;  %v482_v28 = vld [vmem:[#allocation2 + $0x80] sm:$0xff] }
  0x9a   : > { %v484_v26 = vld [vmem:[#allocation2 + $0x90] sm:$0xff]  ;;  %v469_v31 = vld [vmem:[#allocation2 + $0x18] sm:$0xff]  ;;  %v467_v37 = vld [vmem:[#allocation2 + $0x8] sm:$0xff] }
  0x9b   : > { %1603 = vmatpush3.bf16.msra.mxu0 %v1801_v3  ;;  %1656 = vmatpush3.bf16.msra.mxu1 %v1801_v3  ;;  %v485_v32 = vld [vmem:[#allocation2 + $0x98] sm:$0xff]  ;;  %v483_v38 = vld [vmem:[#allocation2 + $0x88] sm:$0xff]  ;;  %v472_v49 = vld [vmem:[#allocation2 + $0x30] sm:$0xff] }
  0x9c   : > { %1604 = vmatprep.subr.bf16.mxu0 %v1802_v4  ;;  %1649 = vmatprep.subr.bf16.mxu1 %v1802_v4  ;;  %v488_v50 = vld [vmem:[#allocation2 + $0xb0] sm:$0xff]  ;;  %v470_v51 = vld [vmem:[#allocation2 + $0x20] sm:$0xff]  ;;  %v473_v55 = vld [vmem:[#allocation2 + $0x38] sm:$0xff] }
  0x9d   : > { %v486_v52 = vld [vmem:[#allocation2 + $0xa0] sm:$0xff]  ;;  %v489_v56 = vld [vmem:[#allocation2 + $0xb8] sm:$0xff]  ;;  %v471_v61 = vld [vmem:[#allocation2 + $0x28] sm:$0xff] }
  0x9e   : > { %v487_v62 = vld [vmem:[#allocation2 + $0xa8] sm:$0xff] }
  0x9f   : > { %1605 = vmatpush3.bf16.msra.mxu0 %v1802_v4  ;;  %1657 = vmatpush3.bf16.msra.mxu1 %v1802_v4 }
  0xa0   : > { %1606 = vmatprep.subr.bf16.mxu0 %v1803_v7  ;;  %1650 = vmatprep.subr.bf16.mxu1 %v1803_v7 }
  0xa3   : > { %1607 = vmatpush3.bf16.msra.mxu0 %v1803_v7  ;;  %1658 = vmatpush3.bf16.msra.mxu1 %v1803_v7 }
  0xa4   : > { %1608 = vmatprep.subr.bf16.mxu0 %v1804_v8  ;;  %1651 = vmatprep.subr.bf16.mxu1 %v1804_v8 }
  0xa7   : > { %1609 = vmatpush3.bf16.msra.mxu0 %v1804_v8  ;;  %1659 = vmatpush3.bf16.msra.mxu1 %v1804_v8 }
  0xa8   : > { %1610 = vmatprep.subr.bf16.mxu0 %v1805_v9  ;;  %1652 = vmatprep.subr.bf16.mxu1 %v1805_v9 }
  0xab   : > { %1611 = vmatpush3.bf16.msra.mxu0 %v1805_v9  ;;  %1660 = vmatpush3.bf16.msra.mxu1 %v1805_v9  ;;  %v476_v9 = vld [vmem:[#allocation2 + $0x50] sm:$0xff] }
  0xac   : > { %1612 = vmatprep.subr.bf16.mxu0 %v1806_v10  ;;  %1653 = vmatprep.subr.bf16.mxu1 %v1806_v10 }
  0xaf   : > { %1613 = vmatpush3.bf16.msra.mxu0 %v1806_v10  ;;  %1661 = vmatpush3.bf16.msra.mxu1 %v1806_v10  ;;  %v492_v10 = vld [vmem:[#allocation2 + $0xd0] sm:$0xff] }
  0xb2   : > { %1615 = vmatmul.mubr.bf16.vlgmr.msra.gmra.mrb[0].mxu0 %v1809_v11  ;;  %1631 = vmatmul.mubr.bf16.vlgmr.msra.gmra.mrb[0].mxu1 %v1810_v12  ;;  %v474_v11 = vld [vmem:[#allocation2 + $0x40] sm:$0xff] }
  0xb3   : > { %1618 = vmatprep.mubr.bf16.mxu0 %v1811_v13  ;;  %1634 = vmatprep.mubr.bf16.mxu1 %v1812_v14  ;;  %v490_v12 = vld [vmem:[#allocation2 + $0xc0] sm:$0xff] }
  0xba   : > { %1619 = vmatmul.mubr.bf16.gmra.mrb[4].mxu0 %v1813_v15  ;;  %1635 = vmatmul.mubr.bf16.gmra.mrb[4].mxu1 %v1814_v16  ;;  %v477_v15 = vld [vmem:[#allocation2 + $0x58] sm:$0xff] }
  0xbb   : > { %1622 = vmatprep.mubr.bf16.mxu0 %v1815_v17  ;;  %1638 = vmatprep.mubr.bf16.mxu1 %v1816_v18  ;;  %v493_v16 = vld [vmem:[#allocation2 + $0xd8] sm:$0xff] }
  0xc2   : > { %1623 = vmatmul.mubr.bf16.gmra.mrb[8].mxu0 %v1817_v19  ;;  %1639 = vmatmul.mubr.bf16.gmra.mrb[8].mxu1 %v1818_v20 }
  0xc3   : > { %1626 = vmatprep.mubr.bf16.mxu0 %v1819_v21  ;;  %1642 = vmatprep.mubr.bf16.mxu1 %v1820_v22  ;;  %v475_v21 = vld [vmem:[#allocation2 + $0x48] sm:$0xff] }
  0xc4   : > { %v491_v22 = vld [vmem:[#allocation2 + $0xc8] sm:$0xff] }
  0xca   : > { %1627 = vmatmul.mubr.bf16.gmra.mrb[12].mxu0 %v1821_v23  ;;  %1643 = vmatmul.mubr.bf16.gmra.mrb[12].mxu1 %v1822_v24 }
 0x185   : > { %v1616_v29 = vpop.f32.mrb[0].mxu0  ;;  %v1632_v30 = vpop.f32.mrb[0].mxu1 }
 0x186   : > { %v821_v33 = vadd.f32 %v1616_v29, %v468_v25  ;;  %v837_v34 = vadd.f32 %v1632_v30, %v484_v26  ;;  %v692_v35 = vpop.f32.mrb[1].mxu0  ;;  %v756_v36 = vpop.f32.mrb[1].mxu1 }
 0x187   : > { %v819_v39 = vadd.f32 %v692_v35, %v466_v27  ;;  %v835_v40 = vadd.f32 %v756_v36, %v482_v28  ;;  %v1617_v41 = vpop.f32.mrb[2].mxu0  ;;  %v1633_v42 = vpop.f32.mrb[2].mxu1  ;;  %v478_v35 = vld [vmem:[#allocation2 + $0x60] sm:$0xff] }
 0x188   : > { %853 = vst [vmem:[#allocation2 + $0x10] sm:$0xff] %v821_v33  ;;  %869 = vst [vmem:[#allocation2 + $0x90] sm:$0xff] %v837_v34  ;;  %v822_v43 = vadd.f32 %v1617_v41, %v469_v31  ;;  %v838_v44 = vadd.f32 %v1633_v42, %v485_v32  ;;  %v695_v45 = vpop.f32.mrb[3].mxu0  ;;  %v759_v46 = vpop.f32.mrb[3].mxu1  ;;  %v480_v33 = vld [vmem:[#allocation2 + $0x70] sm:$0xff]  ;;  %v494_v36 = vld [vmem:[#allocation2 + $0xe0] sm:$0xff] }
 0x189   : > { %851 = vst [vmem:[#allocation2] sm:$0xff] %v819_v39  ;;  %867 = vst [vmem:[#allocation2 + $0x80] sm:$0xff] %v835_v40  ;;  %v820_v47 = vadd.f32 %v695_v45, %v467_v37  ;;  %v836_v48 = vadd.f32 %v759_v46, %v483_v38  ;;  %v496_v34 = vld [vmem:[#allocation2 + $0xf0] sm:$0xff]  ;;  %v481_v39 = vld [vmem:[#allocation2 + $0x78] sm:$0xff] }
 0x18a   : > { %854 = vst [vmem:[#allocation2 + $0x18] sm:$0xff] %v822_v43  ;;  %870 = vst [vmem:[#allocation2 + $0x98] sm:$0xff] %v838_v44  ;;  %v497_v40 = vld [vmem:[#allocation2 + $0xf8] sm:$0xff]  ;;  %v479_v45 = vld [vmem:[#allocation2 + $0x68] sm:$0xff] }
 0x18b   : > { %852 = vst [vmem:[#allocation2 + $0x8] sm:$0xff] %v820_v47  ;;  %868 = vst [vmem:[#allocation2 + $0x88] sm:$0xff] %v836_v48  ;;  %v495_v46 = vld [vmem:[#allocation2 + $0xe8] sm:$0xff] }
 0x18d   : > { %v1620_v53 = vpop.f32.mrb[4].mxu0  ;;  %v1636_v54 = vpop.f32.mrb[4].mxu1 }
 0x18e   : > { %v825_v57 = vadd.f32 %v1620_v53, %v472_v49  ;;  %v841_v58 = vadd.f32 %v1636_v54, %v488_v50  ;;  %v708_v59 = vpop.f32.mrb[5].mxu0  ;;  %v772_v60 = vpop.f32.mrb[5].mxu1 }
 0x18f   : > { %v823_v63 = vadd.f32 %v708_v59, %v470_v51  ;;  %v839_v0 = vadd.f32 %v772_v60, %v486_v52  ;;  %v1621_v1 = vpop.f32.mrb[6].mxu0  ;;  %v1637_v2 = vpop.f32.mrb[6].mxu1  ;;  %v2373_v59 = vld [vmem:[%s2596_s6] ss:$0 sm:$0xff] (!%p1404_p2) }
 0x190   : > { %857 = vst [vmem:[#allocation2 + $0x30] sm:$0xff] %v825_v57  ;;  %873 = vst [vmem:[#allocation2 + $0xb0] sm:$0xff] %v841_v58  ;;  %v826_v3 = vadd.f32 %v1621_v1, %v473_v55  ;;  %v842_v4 = vadd.f32 %v1637_v2, %v489_v56  ;;  %v711_v5 = vpop.f32.mrb[7].mxu0  ;;  %v775_v6 = vpop.f32.mrb[7].mxu1  ;;  %v887_v57 = vld [vmem:[#allocation2] sm:$0xff] (!%p1404_p2) }
 0x191   : > { %855 = vst [vmem:[#allocation2 + $0x20] sm:$0xff] %v823_v63  ;;  %871 = vst [vmem:[#allocation2 + $0xa0] sm:$0xff] %v839_v0  ;;  %v824_v7 = vadd.f32 %v711_v5, %v471_v61  ;;  %v840_v8 = vadd.f32 %v775_v6, %v487_v62  ;;  %v926_v60 = vmul.f32 (!%p1404_p2), %v2373_v59, %v887_v57  ;;  %v2380_v62 = vld [vmem:[%s2597_s17] ss:$0 sm:$0xff] (!%p1404_p2)  ;;  %v889_v63 = vld [vmem:[#allocation2 + $0x10] sm:$0xff] (!%p1404_p2) }
 0x192   : > { %858 = vst [vmem:[#allocation2 + $0x38] sm:$0xff] %v826_v3  ;;  %874 = vst [vmem:[#allocation2 + $0xb8] sm:$0xff] %v842_v4  ;;  %v888_v58 = vld [vmem:[#allocation2 + $0x8] sm:$0xff] (!%p1404_p2)  ;;  %v890_v0 = vld [vmem:[#allocation2 + $0x18] sm:$0xff] (!%p1404_p2)  ;;  %v928_v1 = vmul.f32 (!%p1404_p2), %v2373_v59, %v889_v63 }
 0x193   : > { %856 = vst [vmem:[#allocation2 + $0x28] sm:$0xff] %v824_v7  ;;  %872 = vst [vmem:[#allocation2 + $0xa8] sm:$0xff] %v840_v8  ;;  %v927_v61 = vmul.f32 (!%p1404_p2), %v2373_v59, %v888_v58  ;;  %v929_v2 = vmul.f32 (!%p1404_p2), %v2373_v59, %v890_v0  ;;  %v965_v6 = vadd.f32 (!%p1404_p2), %v2380_v62, %v926_v60  ;;  %v905_v63 = vld [vmem:[#allocation2 + $0x90] sm:$0xff] (!%p1404_p2)  ;;  %v906_v0 = vld [vmem:[#allocation2 + $0x98] sm:$0xff] (!%p1404_p2) }
 0x195   : > { %v1624_v13 = vpop.f32.mrb[8].mxu0  ;;  %v1640_v14 = vpop.f32.mrb[8].mxu1  ;;  %v966_v7 = vadd.f32 (!%p1404_p2), %v2380_v62, %v927_v61 }
 0x196   : > { %v829_v17 = vadd.f32 %v1624_v13, %v476_v9  ;;  %v845_v18 = vadd.f32 %v1640_v14, %v492_v10  ;;  %v724_v19 = vpop.f32.mrb[9].mxu0  ;;  %v788_v20 = vpop.f32.mrb[9].mxu1 }
 0x197   : > { %v827_v23 = vadd.f32 %v724_v19, %v474_v11  ;;  %v843_v24 = vadd.f32 %v788_v20, %v490_v12  ;;  %v1625_v25 = vpop.f32.mrb[10].mxu0  ;;  %v1641_v26 = vpop.f32.mrb[10].mxu1  ;;  %v893_v5 = vld [vmem:[#allocation2 + $0x30] sm:$0xff] (!%p1404_p2)  ;;  %v967_v11 = vadd.f32 (!%p1404_p2), %v2380_v62, %v928_v1  ;;  %v968_v12 = vadd.f32 (!%p1404_p2), %v2380_v62, %v929_v2 }
 0x198   : > { %861 = vst [vmem:[#allocation2 + $0x50] sm:$0xff] %v829_v17  ;;  %877 = vst [vmem:[#allocation2 + $0xd0] sm:$0xff] %v845_v18  ;;  %v830_v27 = vadd.f32 %v1625_v25, %v477_v15  ;;  %v846_v28 = vadd.f32 %v1641_v26, %v493_v16  ;;  %v727_v29 = vpop.f32.mrb[11].mxu0  ;;  %v791_v30 = vpop.f32.mrb[11].mxu1  ;;  %v891_v3 = vld [vmem:[#allocation2 + $0x20] sm:$0xff] (!%p1404_p2)  ;;  %v932_v13 = vmul.f32 (!%p1404_p2), %v2373_v59, %v893_v5  ;;  %v997_v16 = vmax.f32 (!%p1404_p2), %v965_v6, 0.0 }
 0x199   : > { %859 = vst [vmem:[#allocation2 + $0x40] sm:$0xff] %v827_v23  ;;  %875 = vst [vmem:[#allocation2 + $0xc0] sm:$0xff] %v843_v24  ;;  %v828_v31 = vadd.f32 %v727_v29, %v475_v21  ;;  %v844_v32 = vadd.f32 %v791_v30, %v491_v22  ;;  %v930_v8 = vmul.f32 (!%p1404_p2), %v2373_v59, %v891_v3  ;;  %v894_v10 = vld [vmem:[#allocation2 + $0x38] sm:$0xff] (!%p1404_p2)  ;;  %v998_v17 = vmax.f32 (!%p1404_p2), %v966_v7, 0.0  ;;  %v907_v5 = vld [vmem:[#allocation2 + $0xa0] sm:$0xff] (!%p1404_p2) }
 0x19a   : > { %862 = vst [vmem:[#allocation2 + $0x58] sm:$0xff] %v830_v27  ;;  %878 = vst [vmem:[#allocation2 + $0xd8] sm:$0xff] %v846_v28  ;;  %v892_v4 = vld [vmem:[#allocation2 + $0x28] sm:$0xff] (!%p1404_p2)  ;;  %v933_v14 = vmul.f32 (!%p1404_p2), %v2373_v59, %v894_v10  ;;  %v999_v21 = vmax.f32 (!%p1404_p2), %v967_v11, 0.0  ;;  %v1000_v22 = vmax.f32 (!%p1404_p2), %v968_v12, 0.0  ;;  %v971_v23 = vadd.f32 (!%p1404_p2), %v2380_v62, %v932_v13  ;;  %v909_v11 = vld [vmem:[#allocation2 + $0xb0] sm:$0xff] (!%p1404_p2) }
 0x19b   : > { %860 = vst [vmem:[#allocation2 + $0x48] sm:$0xff] %v828_v31  ;;  %876 = vst [vmem:[#allocation2 + $0xc8] sm:$0xff] %v844_v32  ;;  %v931_v9 = vmul.f32 (!%p1404_p2), %v2373_v59, %v892_v4  ;;  %v969_v18 = vadd.f32 (!%p1404_p2), %v2380_v62, %v930_v8  ;;  %v1482_v27 = vpack.c.bf16 (!%p1404_p2), %v998_v17, %v997_v16  ;;  %v908_v6 = vld [vmem:[#allocation2 + $0xa8] sm:$0xff] (!%p1404_p2)  ;;  %v910_v16 = vld [vmem:[#allocation2 + $0xb8] sm:$0xff] (!%p1404_p2) }
 0x19c   : > { %v972_v24 = vadd.f32 (!%p1404_p2), %v2380_v62, %v933_v14  ;;  %v944_v14 = vmul.f32 (!%p1404_p2), %v2373_v59, %v905_v63 }
 0x19d   : > { %v1628_v37 = vpop.f32.mrb[12].mxu0  ;;  %v1644_v38 = vpop.f32.mrb[12].mxu1  ;;  %886 = sbr.rel (%p1404_p2) target bundleno = 445 (0x1bd), region = 60  ;;  %v970_v19 = vadd.f32 (!%p1404_p2), %v2380_v62, %v931_v9  ;;  %v1001_v28 = vmax.f32 (!%p1404_p2), %v969_v18, 0.0  ;;  %1483 = vst [vmem:[%s2342_s13] sm:$0xff] (!%p1404_p2), %v1482_v27  }
 0x19e   : > { %v833_v41 = vadd.f32 %v1628_v37, %v480_v33  ;;  %v849_v42 = vadd.f32 %v1644_v38, %v496_v34  ;;  %v740_v43 = vpop.f32.mrb[13].mxu0  ;;  %v804_v44 = vpop.f32.mrb[13].mxu1  ;;  %v1487_v33 = vpack.c.bf16 (!%p1404_p2), %v1000_v22, %v999_v21  ;;  %v1003_v34 = vmax.f32 (!%p1404_p2), %v971_v23, 0.0 }
 0x19f   : > { %v831_v47 = vadd.f32 %v740_v43, %v478_v35  ;;  %v847_v48 = vadd.f32 %v804_v44, %v494_v36  ;;  %v1629_v49 = vpop.f32.mrb[14].mxu0  ;;  %v1645_v50 = vpop.f32.mrb[14].mxu1  ;;  %v897_v25 = vld [vmem:[#allocation2 + $0x50] sm:$0xff] (!%p1404_p2)  ;;  %v1002_v29 = vmax.f32 (!%p1404_p2), %v970_v19, 0.0  ;;  %v1004_v35 = vmax.f32 (!%p1404_p2), %v972_v24, 0.0 }
 0x1a0   : > { %865 = vst [vmem:[#allocation2 + $0x70] sm:$0xff] %v833_v41  ;;  %881 = vst [vmem:[#allocation2 + $0xf0] sm:$0xff] %v849_v42  ;;  %v834_v51 = vadd.f32 %v1629_v49, %v481_v39  ;;  %v850_v52 = vadd.f32 %v1645_v50, %v497_v40  ;;  %v743_v53 = vpop.f32.mrb[15].mxu0  ;;  %v807_v54 = vpop.f32.mrb[15].mxu1  ;;  %v895_v15 = vld [vmem:[#allocation2 + $0x40] sm:$0xff] (!%p1404_p2)  ;;  %v936_v40 = vmul.f32 (!%p1404_p2), %v2373_v59, %v897_v25 }
 0x1a1   : > { %863 = vst [vmem:[#allocation2 + $0x60] sm:$0xff] %v831_v47  ;;  %879 = vst [vmem:[#allocation2 + $0xe0] sm:$0xff] %v847_v48  ;;  %v832_v55 = vadd.f32 %v743_v53, %v479_v45  ;;  %v848_v56 = vadd.f32 %v807_v54, %v495_v46  ;;  %v898_v26 = vld [vmem:[#allocation2 + $0x58] sm:$0xff] (!%p1404_p2)  ;;  %v934_v30 = vmul.f32 (!%p1404_p2), %v2373_v59, %v895_v15  ;;  %v903_v47 = vld [vmem:[#allocation2 + $0x80] sm:$0xff] (!%p1404_p2) }
 0x1a2   : > { %866 = vst [vmem:[#allocation2 + $0x78] sm:$0xff] %v834_v51  ;;  %882 = vst [vmem:[#allocation2 + $0xf8] sm:$0xff] %v850_v52  ;;  %v896_v20 = vld [vmem:[#allocation2 + $0x48] sm:$0xff] (!%p1404_p2)  ;;  %v1492_v38 = vpack.c.bf16 (!%p1404_p2), %v1002_v29, %v1001_v28  ;;  %v937_v41 = vmul.f32 (!%p1404_p2), %v2373_v59, %v898_v26  ;;  %v1497_v43 = vpack.c.bf16 (!%p1404_p2), %v1004_v35, %v1003_v34  ;;  %v911_v21 = vld [vmem:[#allocation2 + $0xc0] sm:$0xff] (!%p1404_p2) }
 0x1a3   : > { %864 = vst [vmem:[#allocation2 + $0x68] sm:$0xff] %v832_v55  ;;  %880 = vst [vmem:[#allocation2 + $0xe8] sm:$0xff] %v848_v56  ;;  %v935_v36 = vmul.f32 (!%p1404_p2), %v2373_v59, %v896_v20  ;;  %v973_v39 = vadd.f32 (!%p1404_p2), %v2380_v62, %v934_v30  ;;  %v975_v49 = vadd.f32 (!%p1404_p2), %v2380_v62, %v936_v40  ;;  %v904_v56 = vld [vmem:[#allocation2 + $0x88] sm:$0xff] (!%p1404_p2)  ;;  %v913_v35 = vld [vmem:[#allocation2 + $0xd0] sm:$0xff] (!%p1404_p2) }
 0x1a4   : > { %1559 = vst [vmem:[%s2342_s13 + $0x8] sm:$0xff] %v1487_v33   ;;  %1560 = vst [vmem:[%s2342_s13 + $0x10] sm:$0xff] %v1492_v38   ;;  %v976_v50 = vadd.f32 %v2380_v62, %v937_v41  ;;  %v942_v61 = vmul.f32 %v2373_v59, %v903_v47  ;;  %v943_v9 = vmul.f32 %v2373_v59, %v904_v56  ;;  %v912_v30 = vld [vmem:[#allocation2 + $0xc8] sm:$0xff] }
 0x1a5   : > { %v974_v44 = vadd.f32 %v2380_v62, %v935_v36  ;;  %v1005_v48 = vmax.f32 %v973_v39, 0.0  ;;  %1561 = vst [vmem:[%s2342_s13 + $0x18] sm:$0xff] %v1497_v43   ;;  %v1007_v57 = vmax.f32 %v975_v49, 0.0  ;;  %v945_v15 = vmul.f32 %v2373_v59, %v906_v0  ;;  %v914_v36 = vld [vmem:[#allocation2 + $0xd8] sm:$0xff] }
 0x1a6   : > { %v1008_v58 = vmax.f32 %v976_v50, 0.0  ;;  %v981_v10 = vadd.f32 %v2380_v62, %v942_v61  ;;  %v982_v17 = vadd.f32 %v2380_v62, %v943_v9  ;;  %v946_v19 = vmul.f32 %v2373_v59, %v907_v5 }
 0x1a7   : > { %v901_v37 = vld [vmem:[#allocation2 + $0x70] sm:$0xff]  ;;  %v1006_v52 = vmax.f32 %v974_v44, 0.0  ;;  %v947_v20 = vmul.f32 %v2373_v59, %v908_v6  ;;  %v983_v23 = vadd.f32 %v2380_v62, %v944_v14  ;;  %v984_v24 = vadd.f32 %v2380_v62, %v945_v15 }
 0x1a8   : > { %v899_v31 = vld [vmem:[#allocation2 + $0x60] sm:$0xff]  ;;  %v940_v51 = vmul.f32 %v2373_v59, %v901_v37  ;;  %v1507_v7 = vpack.c.bf16 %v1008_v58, %v1007_v57  ;;  %v1013_v18 = vmax.f32 %v981_v10, 0.0  ;;  %v948_v25 = vmul.f32 %v2373_v59, %v909_v11  ;;  %v917_v47 = vld [vmem:[#allocation2 + $0xf0] sm:$0xff] }
 0x1a9   : > { %v902_v42 = vld [vmem:[#allocation2 + $0x78] sm:$0xff]  ;;  %v938_v45 = vmul.f32 %v2373_v59, %v899_v31  ;;  %v1502_v1 = vpack.c.bf16 %v1006_v52, %v1005_v48  ;;  %v1014_v26 = vmax.f32 %v982_v17, 0.0  ;;  %v985_v27 = vadd.f32 %v2380_v62, %v946_v19  ;;  %v915_v41 = vld [vmem:[#allocation2 + $0xe0] sm:$0xff] }
 0x1aa   : > { %v900_v32 = vld [vmem:[#allocation2 + $0x68] sm:$0xff]  ;;  %v941_v55 = vmul.f32 %v2373_v59, %v902_v42  ;;  %v979_v60 = vadd.f32 %v2380_v62, %v940_v51  ;;  %1563 = vst [vmem:[%s2342_s13 + $0x28] sm:$0xff] %v1507_v7   ;;  %v986_v28 = vadd.f32 %v2380_v62, %v947_v20  ;;  %v949_v29 = vmul.f32 %v2373_v59, %v910_v16  ;;  %v918_v52 = vld [vmem:[#allocation2 + $0xf8] sm:$0xff] }
 0x1ab   : > { %v939_v46 = vmul.f32 %v2373_v59, %v900_v32  ;;  %v977_v53 = vadd.f32 %v2380_v62, %v938_v45  ;;  %1562 = vst [vmem:[%s2342_s13 + $0x20] sm:$0xff] %v1502_v1   ;;  %v1015_v31 = vmax.f32 %v983_v23, 0.0  ;;  %v1016_v32 = vmax.f32 %v984_v24, 0.0  ;;  %v916_v42 = vld [vmem:[#allocation2 + $0xe8] sm:$0xff] }
 0x1ac   : > { %v980_v4 = vadd.f32 %v2380_v62, %v941_v55  ;;  %v1011_v8 = vmax.f32 %v979_v60, 0.0  ;;  %v987_v33 = vadd.f32 %v2380_v62, %v948_v25  ;;  %v950_v34 = vmul.f32 %v2373_v59, %v911_v21 }
 0x1ad   : > { %v978_v54 = vadd.f32 %v2380_v62, %v939_v46  ;;  %v1009_v2 = vmax.f32 %v977_v53, 0.0  ;;  %v1522_v37 = vpack.c.bf16 %v1014_v26, %v1013_v18  ;;  %v1017_v38 = vmax.f32 %v985_v27, 0.0 }
 0x1ae   : > { %v1012_v13 = vmax.f32 %v980_v4, 0.0  ;;  %v1018_v39 = vmax.f32 %v986_v28, 0.0  ;;  %v988_v40 = vadd.f32 %v2380_v62, %v949_v29  ;;  %v1527_v43 = vpack.c.bf16 %v1016_v32, %v1015_v31 }
 0x1af   : > { %v1010_v3 = vmax.f32 %v978_v54, 0.0  ;;  %v1019_v44 = vmax.f32 %v987_v33, 0.0  ;;  %v951_v45 = vmul.f32 %v2373_v59, %v912_v30  ;;  %v989_v46 = vadd.f32 %v2380_v62, %v950_v34  ;;  %1566 = vst [vmem:[%s2342_s13 + $0x40] sm:$0xff] %v1522_v37  }
 0x1b0   : > { %v1517_v22 = vpack.c.bf16 %v1012_v13, %v1011_v8  ;;  %v1532_v48 = vpack.c.bf16 %v1018_v39, %v1017_v38  ;;  %v1020_v49 = vmax.f32 %v988_v40, 0.0  ;;  %v952_v50 = vmul.f32 %v2373_v59, %v913_v35  ;;  %1567 = vst [vmem:[%s2342_s13 + $0x48] sm:$0xff] %v1527_v43  }
 0x1b1   : > { %v1512_v12 = vpack.c.bf16 %v1010_v3, %v1009_v2  ;;  %v953_v51 = vmul.f32 %v2373_v59, %v914_v36  ;;  %v990_v53 = vadd.f32 %v2380_v62, %v951_v45  ;;  %v1021_v54 = vmax.f32 %v989_v46, 0.0 }
 0x1b2   : > { %1565 = vst [vmem:[%s2342_s13 + $0x38] sm:$0xff] %v1517_v22   ;;  %v954_v55 = vmul.f32 %v2373_v59, %v915_v41  ;;  %v955_v56 = vmul.f32 %v2373_v59, %v916_v42  ;;  %1568 = vst [vmem:[%s2342_s13 + $0x50] sm:$0xff] %v1532_v48   ;;  %v1537_v57 = vpack.c.bf16 %v1020_v49, %v1019_v44 }
 0x1b3   : > { %1564 = vst [vmem:[%s2342_s13 + $0x30] sm:$0xff] %v1512_v12   ;;  %v991_v58 = vadd.f32 %v2380_v62, %v952_v50  ;;  %v992_v60 = vadd.f32 %v2380_v62, %v953_v51  ;;  %v956_v61 = vmul.f32 %v2373_v59, %v917_v47  ;;  %v1022_v63 = vmax.f32 %v990_v53, 0.0 }
 0x1b4   : > { %v993_v0 = vadd.f32 %v2380_v62, %v954_v55  ;;  %v994_v1 = vadd.f32 %v2380_v62, %v955_v56  ;;  %v957_v2 = vmul.f32 %v2373_v59, %v918_v52  ;;  %1569 = vst [vmem:[%s2342_s13 + $0x58] sm:$0xff] %v1537_v57  }
 0x1b5   : > { %v1023_v3 = vmax.f32 %v991_v58, 0.0  ;;  %v1024_v4 = vmax.f32 %v992_v60, 0.0  ;;  %v995_v5 = vadd.f32 %v2380_v62, %v956_v61  ;;  %v1542_v6 = vpack.c.bf16 %v1022_v63, %v1021_v54 }
 0x1b6   : > { %v1025_v7 = vmax.f32 %v993_v0, 0.0  ;;  %v1026_v8 = vmax.f32 %v994_v1, 0.0  ;;  %v996_v9 = vadd.f32 %v2380_v62, %v957_v2 }
 0x1b7   : > { %v1547_v10 = vpack.c.bf16 %v1024_v4, %v1023_v3  ;;  %v1027_v11 = vmax.f32 %v995_v5, 0.0  ;;  %1570 = vst [vmem:[%s2342_s13 + $0x60] sm:$0xff] %v1542_v6  }
 0x1b8   : > { %v1552_v12 = vpack.c.bf16 %v1026_v8, %v1025_v7  ;;  %v1028_v13 = vmax.f32 %v996_v9, 0.0 }
 0x1b9   : > { %1571 = vst [vmem:[%s2342_s13 + $0x68] sm:$0xff] %v1547_v10  }
 0x1ba   : > { %1572 = vst [vmem:[%s2342_s13 + $0x70] sm:$0xff] %v1552_v12   ;;  %v1557_v14 = vpack.c.bf16 %v1028_v13, %v1027_v11 }
 0x1bc   : > { %1573 = vst [vmem:[%s2342_s13 + $0x78] sm:$0xff] %v1557_v14  }
 0x1bd PF: > { %s2598_s25 = sld [smem:[#allocation14_spill]]  ;;  %s2599_s9 = sld [smem:[#allocation21_spill]] }
 0x1be   : > { %s1204_s11 = sshll.u32 %s2342_s13, 4  ;;  %s2471_s4 = scalar_lea.sflag [#allocation5], %s379_s29  ;;  %s2467_s11 = int_to_ptr.vmem [resolvable:$true] %s1204_s11 }
 0x1bf   : > { %s1883_s0 = scalar_lea.vmem %s2467_s11, 2048  ;;  %p2600_p10 = scmp.ne.s32.totalorder %s2585_s21, 0 }
 0x1c0   : > { %p1884_p13 = scmp.ne.s32.totalorder %s2467_s11, %s1883_s0  ;;  %s2041_s10 = smov [#allocation8]  }
 0x1c1   : > { %s1887_s6 = sshll.u32 %s2041_s10, 4  ;;  %s1888_s6 = int_to_ptr.vmem [resolvable:$false] %s1887_s6 }
 0x1c2   : > { %p1885_p9 = pnand %p1884_p13, %p2600_p10  ;;  %s1889_s16 = scalar_lea.vmem %s1888_s6, 4096 }
 0x1c3   : > { %s1478_s28 = sshll.u32 %s2598_s25, 11  ;;  %p1890_p6 = scmp.lt.s32.totalorder %s2467_s11, %s1888_s6 }
 0x1c4   : > { %s2464_s14 = scalar_lea.hbm %s2599_s9, %s1478_s28  ;;  %p1886_p3 = pneg %p1885_p9 }
 0x1c5   : > { %p1891_p11 = scmp.lt.s32.totalorder %s1889_s16, %s1883_s0 }
 0x1c7   : > { %p1892_p12 = por %p1891_p11, %p1890_p6 }
 0x1c9   : > { %p1893_p0 = pnand %p1892_p12, %p1886_p3 }
 0x1cb   : > { %1896 = shalt.err (!%p1893_p0)
}
 0x1cc   : > { %s1897_s29 = scalar_lea.hbm %s2464_s14, 2048  ;;  %s1901_s17 = scalar_lea.hbm %s2599_s9, 4096 }
 0x1cd   : > { %p1898_p8 = scmp.ne.s32.totalorder %s2464_s14, %s1897_s29  ;;  %p1902_p5 = scmp.lt.u32.totalorder %s2464_s14, %s2599_s9 }
 0x1ce   : > { %p1903_p4 = scmp.lt.u32.totalorder %s1901_s17, %s1897_s29  ;;  %p1905_p13 = scmp.lt.u32.totalorder %s1897_s29, %s2464_s14 }
 0x1cf   : > { %p1899_p7 = pnand %p1898_p8, %p2600_p10 }
 0x1d0   : > { %p1904_p2 = por %p1903_p4, %p1902_p5 }
 0x1d1   : > { %p1900_p1 = pneg %p1899_p7 }
 0x1d2   : > { %p1906_p9 = por %p1905_p13, %p1904_p2 }
 0x1d4   : > { %p1907_p3 = pnand %p1906_p9, %p1900_p1 }
 0x1d6   : > { %1910 = shalt.err (!%p1907_p3)
}
 0x1d7   : > { %s2042_s22 = smov 64   ;;  %s2043_s1 = smov 4  }
 0x1d8   : > { %1666 = dma.vmem_to_hbm [thread:$0]  (%p2600_p10), %s2467_s11, 2048, %s2464_s14, %s2471_s4, %s2042_s22, %s2042_s22, %s2043_s1  }
 0x1d9 PF: > { %s2601_s0 = sld [smem:[#allocation12_spill]]  ;;  %p1680_p6 = scmp.ge.s32.totalorder %s2033_s8, 2 }
 0x1da   : > { %p2602_p11 = scmp.ne.s32.totalorder %s2586_s5, 0 }
 0x1dc   : > { %p1676_p12 = pnand %p1680_p6, %p2602_p11 }
 0x1df   : > { %s1219_s10 = sand.u32 1, %s2601_s0  }
 0x1e0   : > { %s1220_s6 = scalar_lea.sflag [#allocation5], %s1219_s10 }
 0x1e1   : > { %1976 = dma.done.wait (!%p1676_p12), %s1220_s6, 2048  }
 0x1e2   : > { %1978 = vsyncadd (!%p1676_p12), %s1220_s6, 4294965248  ;;  %s25_s8 = sadd.s32 1, %s2033_s8   ;;  %s2604_s5 = sld [smem:[#allocation15_spill]] }
 0x1e3   : > { %p2500_p0 = scmp.ge.s32.totalorder %s25_s8, 6   ;;  %s2605_s14 = sld [smem:[#allocation16_spill]] }
 0x1e4   : > { %s2606_s21 = smov %s1985_s2  ;;  %s2607_s2 = smov %s1989_s3 }
 0x1e5   : > { %s2608_s3 = smov %s2180_s18  ;;  %s2609_s22 = smov %s1997_s23 }
 0x1e6   : > { %s2610_s23 = smov %s2001_s24  ;;  %s2611_s24 = smov %s2246_s15 }
 0x1e7   : > { %s2612_s25 = smov %s2009_s26  ;;  %s2613_s26 = smov %s2013_s27 }
 0x1e8   : > { %s2614_s27 = smov %s2183_s19  ;;  %s2615_s28 = smov %s2025_s30 }
 0x1e9   : > { %s2616_s29 = smov %s2029_s7  ;;  %s2617_s30 = smov %s2604_s5 }
 0x1ea   : > { %s2618_s7 = smov %s2605_s14  ;;  %24 = sbr.rel (!%p2500_p0) target bundleno = 18 (0x12), region = 122 }
 0x1f1   :  { %1225 = vsyncpa [#allocation4], 1 }
 0x1f2   :  { %1227 = vsyncpa [#allocation4 + $0x1], 1 }
 0x1f3   :  { %1228 = vsyncpa [#allocation7], 1 }
 0x1f4   :  { %1230 = vsyncpa [#allocation7 + $0x1], 1 }
 0x1f5   :  { %1231 = vsyncpa [#allocation5], 1 }
 0x1f6   :  { %1233 = vsyncpa [#allocation5 + $0x1], 1 }

</bundles_post_ra>
